<compile_context>
chip_gen: v6e
topology: v6e:2x2x1
jax: 0.10.0
libtpu: 0.0.40
codegen_flags: <defaults>
</compile_context>

<pallas_src>
import functools

import jax
import jax.numpy as jnp
from jax.experimental import pallas as pl
from jax.experimental.pallas import tpu as pltpu


COMPUTE_DTYPE = jnp.bfloat16   # MXU operand dtype; accumulation stays f32
ROW_TILE = 512                 # rows per grid step (multiple of 128); halve on v7x


# ------------------------------- helpers ------------------------------------

def _round_up(x, m):
    return (x + m - 1) // m * m


def _tile_and_pad(m, max_tile=ROW_TILE):
    """Pick (tile, padded_extent). tile == padded extent when it fits in one
    block, otherwise max_tile (a multiple of 128) with the extent rounded up."""
    m_pad = _round_up(max(int(m), 8), 16)
    if m_pad <= max_tile:
        return m_pad, m_pad
    return max_tile, _round_up(m_pad, max_tile)


def _pad_rows(x, rows, value=0):
    r = x.shape[0]
    if r == rows:
        return x
    pad = jnp.full((rows - r,) + x.shape[1:], value, x.dtype)
    return jnp.concatenate([x, pad], axis=0)


# ----------------------------- Pallas kernels -------------------------------

def _linear_kernel(x_ref, w_ref, b_ref, o_ref):
    y = jnp.dot(x_ref[...], w_ref[...], preferred_element_type=jnp.float32)
    y = y + b_ref[...]
    o_ref[...] = y.astype(o_ref.dtype)


def pallas_linear(x, w, b, out_dtype):
    """y = x @ w + b (embedding / embedding_out). Rows must be pre-padded."""
    M, K = x.shape
    N = w.shape[1]
    tile, m_pad = _tile_and_pad(M)
    assert m_pad == M, "rows must be pre-padded"
    return pl.pallas_call(
        _linear_kernel,
        out_shape=jax.ShapeDtypeStruct((M, N), out_dtype),
        grid=(M // tile,),
        in_specs=[
            pl.BlockSpec((tile, K), lambda i: (i, 0)),
            pl.BlockSpec((K, N), lambda i: (0, 0)),      # weight resident
            pl.BlockSpec((1, N), lambda i: (0, 0)),
        ],
        out_specs=pl.BlockSpec((tile, N), lambda i: (i, 0)),
        compiler_params=pltpu.CompilerParams(dimension_semantics=("parallel",)),
        cost_estimate=pl.CostEstimate(
            flops=2 * M * K * N, transcendentals=0,
            bytes_accessed=M * K * 2 + K * N * 2 + M * N * 2),
    )(x.astype(COMPUTE_DTYPE), w.astype(COMPUTE_DTYPE),
      b.reshape(1, N).astype(jnp.float32))


def _edge_mlp_kernel(*refs, has_ea, has_mask):
    """Fused edge MLP: (src@W1s + tgt@W1t [+ ea@W1e] + b1) -> SiLU -> @W2 + b2
    -> SiLU -> [* edge_mask]. Intermediates stay in VMEM/vregs."""
    it = iter(refs)
    src_ref = next(it)
    tgt_ref = next(it)
    ea_ref = next(it) if has_ea else None
    mask_ref = next(it) if has_mask else None
    w1s_ref = next(it)
    w1t_ref = next(it)
    w1e_ref = next(it) if has_ea else None
    b1_ref = next(it)
    w2_ref = next(it)
    b2_ref = next(it)
    o_ref = next(it)

    # split-K first linear == concat([src, tgt, edge_attr]) @ W1 + b1
    y = jnp.dot(src_ref[...], w1s_ref[...], preferred_element_type=jnp.float32)
    y = y + jnp.dot(tgt_ref[...], w1t_ref[...], preferred_element_type=jnp.float32)
    if has_ea:
        y = y + jnp.dot(ea_ref[...], w1e_ref[...], preferred_element_type=jnp.float32)
    y = y + b1_ref[...]
    y = y * jax.nn.sigmoid(y)                                        # SiLU
    y = jnp.dot(y.astype(w2_ref.dtype), w2_ref[...],
                preferred_element_type=jnp.float32) + b2_ref[...]
    y = y * jax.nn.sigmoid(y)                                        # SiLU (== mij)
    # TODO(synk): attention=True path (att_mlp + sigmoid gating) not implemented
    # (module default attention=False).
    if has_mask:
        y = y * mask_ref[...]
    o_ref[...] = y.astype(o_ref.dtype)


def pallas_edge_mlp(src, tgt, edge_attr, edge_mask, w1s, w1t, w1e, b1, w2, b2):
    E, H = src.shape
    Hh = w1s.shape[1]
    Ho = w2.shape[1]
    tile, e_pad = _tile_and_pad(E)
    assert e_pad == E, "edge rows must be pre-padded"
    has_ea = edge_attr is not None
    has_mask = edge_mask is not None

    inputs = [src.astype(COMPUTE_DTYPE), tgt.astype(COMPUTE_DTYPE)]
    in_specs = [pl.BlockSpec((tile, H), lambda i: (i, 0)),
                pl.BlockSpec((tile, H), lambda i: (i, 0))]
    flops = 2 * E * H * Hh * 2 + 2 * E * Hh * Ho
    if has_ea:
        ein = edge_attr.shape[1]
        inputs.append(edge_attr.astype(COMPUTE_DTYPE))
        in_specs.append(pl.BlockSpec((tile, ein), lambda i: (i, 0)))
        flops += 2 * E * ein * Hh
    if has_mask:
        inputs.append(edge_mask.astype(jnp.float32))
        in_specs.append(pl.BlockSpec((tile, 1), lambda i: (i, 0)))

    # weights / biases stay resident across the row grid
    inputs += [w1s.astype(COMPUTE_DTYPE), w1t.astype(COMPUTE_DTYPE)]
    in_specs += [pl.BlockSpec((H, Hh), lambda i: (0, 0)),
                 pl.BlockSpec((H, Hh), lambda i: (0, 0))]
    if has_ea:
        inputs.append(w1e.astype(COMPUTE_DTYPE))
        in_specs.append(pl.BlockSpec((edge_attr.shape[1], Hh), lambda i: (0, 0)))
    inputs += [b1.reshape(1, Hh).astype(jnp.float32),
               w2.astype(COMPUTE_DTYPE),
               b2.reshape(1, Ho).astype(jnp.float32)]
    in_specs += [pl.BlockSpec((1, Hh), lambda i: (0, 0)),
                 pl.BlockSpec((Hh, Ho), lambda i: (0, 0)),
                 pl.BlockSpec((1, Ho), lambda i: (0, 0))]

    return pl.pallas_call(
        functools.partial(_edge_mlp_kernel, has_ea=has_ea, has_mask=has_mask),
        out_shape=jax.ShapeDtypeStruct((E, Ho), COMPUTE_DTYPE),
        grid=(E // tile,),
        in_specs=in_specs,
        out_specs=pl.BlockSpec((tile, Ho), lambda i: (i, 0)),
        compiler_params=pltpu.CompilerParams(dimension_semantics=("parallel",)),
        cost_estimate=pl.CostEstimate(
            flops=flops, transcendentals=E * (Hh + Ho),
            bytes_accessed=E * (2 * H + Ho) * 2),
    )(*inputs)


def _node_mlp_kernel(*refs, has_mask):
    """Fused node MLP: (h@W1h + agg@W1a + b1) -> SiLU -> @W2 + b2 -> +h residual
    -> [* node_mask]."""
    it = iter(refs)
    h_ref = next(it)
    agg_ref = next(it)
    mask_ref = next(it) if has_mask else None
    w1h_ref = next(it)
    w1a_ref = next(it)
    b1_ref = next(it)
    w2_ref = next(it)
    b2_ref = next(it)
    o_ref = next(it)

    y = jnp.dot(h_ref[...], w1h_ref[...], preferred_element_type=jnp.float32)
    y = y + jnp.dot(agg_ref[...], w1a_ref[...], preferred_element_type=jnp.float32)
    y = y + b1_ref[...]
    y = y * jax.nn.sigmoid(y)                                        # SiLU
    # TODO(synk): normalization='batch_norm' node_mlp variant not implemented
    # (module default normalization=None).
    y = jnp.dot(y.astype(w2_ref.dtype), w2_ref[...],
                preferred_element_type=jnp.float32) + b2_ref[...]
    out = h_ref[...].astype(jnp.float32) + y                         # residual
    if has_mask:
        out = out * mask_ref[...]
    o_ref[...] = out.astype(o_ref.dtype)


def pallas_node_mlp(h, agg, node_mask, w1h, w1a, b1, w2, b2):
    N, H = h.shape
    Hh = w1h.shape[1]
    Ho = w2.shape[1]
    assert Ho == H, "residual requires output_nf == input_nf"
    tile, n_pad = _tile_and_pad(N)
    assert n_pad == N, "node rows must be pre-padded"
    has_mask = node_mask is not None

    inputs = [h.astype(COMPUTE_DTYPE), agg.astype(COMPUTE_DTYPE)]
    in_specs = [pl.BlockSpec((tile, H), lambda i: (i, 0)),
                pl.BlockSpec((tile, H), lambda i: (i, 0))]
    if has_mask:
        inputs.append(node_mask.astype(jnp.float32))
        in_specs.append(pl.BlockSpec((tile, 1), lambda i: (i, 0)))
    inputs += [w1h.astype(COMPUTE_DTYPE), w1a.astype(COMPUTE_DTYPE),
               b1.reshape(1, Hh).astype(jnp.float32),
               w2.astype(COMPUTE_DTYPE), b2.reshape(1, Ho).astype(jnp.float32)]
    in_specs += [pl.BlockSpec((H, Hh), lambda i: (0, 0)),
                 pl.BlockSpec((H, Hh), lambda i: (0, 0)),
                 pl.BlockSpec((1, Hh), lambda i: (0, 0)),
                 pl.BlockSpec((Hh, Ho), lambda i: (0, 0)),
                 pl.BlockSpec((1, Ho), lambda i: (0, 0))]

    return pl.pallas_call(
        functools.partial(_node_mlp_kernel, has_mask=has_mask),
        out_shape=jax.ShapeDtypeStruct((N, Ho), COMPUTE_DTYPE),
        grid=(N // tile,),
        in_specs=in_specs,
        out_specs=pl.BlockSpec((tile, Ho), lambda i: (i, 0)),
        compiler_params=pltpu.CompilerParams(dimension_semantics=("parallel",)),
        cost_estimate=pl.CostEstimate(
            flops=2 * N * (2 * H * Hh + Hh * Ho), transcendentals=N * Hh,
            bytes_accessed=N * (2 * H + Ho) * 2),
    )(*inputs)


def _segment_sum_kernel(row_ref, data_ref, o_ref, acc_ref, *cnt_refs, norm, method):
    """Scatter-add over edges as (one-hot @ data) on the MXU, tiled over the edge
    (reduction) axis with an f32 VMEM accumulator."""
    e = pl.program_id(0)

    @pl.when(e == 0)
    def _init():
        acc_ref[...] = jnp.zeros_like(acc_ref)
        if method == "mean":
            cnt_refs[0][...] = jnp.zeros_like(cnt_refs[0])

    row = row_ref[...]                                          # (1, TE) int32
    n_seg = acc_ref.shape[0]
    seg = jax.lax.broadcasted_iota(jnp.int32, (n_seg, row.shape[1]), 0)
    onehot = (seg == row).astype(COMPUTE_DTYPE)                 # exact in bf16
    acc_ref[...] += jnp.dot(onehot, data_ref[...],
                            preferred_element_type=jnp.float32)
    if method == "mean":
        cnt_refs[0][...] += jnp.sum(onehot.astype(jnp.float32), axis=1,
                                    keepdims=True)

    @pl.when(e == pl.num_programs(0) - 1)
    def _finalize():
        agg = acc_ref[...]
        if method == "sum":
            agg = agg * (1.0 / norm)
        elif method == "mean":
            cnt = jnp.maximum(cnt_refs[0][...], 1.0)
            agg = agg / cnt
        o_ref[...] = agg.astype(o_ref.dtype)


def pallas_segment_sum(data, seg_ids, num_segments, normalization_factor,
                       aggregation_method):
    """num_segments is the (padded) node count; seg_ids of padded edges must be
    >= the real node count so they never hit a live segment."""
    E, F = data.shape
    tile, e_pad = _tile_and_pad(E)
    assert e_pad == E, "edge rows must be pre-padded"
    S = num_segments
    # TODO(synk): for very large graphs also tile over num_segments (S) instead
    # of keeping the full (S, F) accumulator resident.
    scratch = [pltpu.VMEM((S, F), jnp.float32)]
    if aggregation_method == "mean":
        scratch.append(pltpu.VMEM((S, 1), jnp.float32))

    return pl.pallas_call(
        functools.partial(_segment_sum_kernel,
                          norm=float(normalization_factor),
                          method=aggregation_method),
        out_shape=jax.ShapeDtypeStruct((S, F), COMPUTE_DTYPE),
        grid=(E // tile,),
        in_specs=[pl.BlockSpec((1, tile), lambda e: (0, e)),
                  pl.BlockSpec((tile, F), lambda e: (e, 0))],
        out_specs=pl.BlockSpec((S, F), lambda e: (0, 0)),
        scratch_shapes=scratch,
        compiler_params=pltpu.CompilerParams(dimension_semantics=("arbitrary",)),
        cost_estimate=pl.CostEstimate(
            flops=2 * E * S * F, transcendentals=0,
            bytes_accessed=E * F * 2 + S * F * 2 + E * 4),
    )(seg_ids.astype(jnp.int32).reshape(1, E), data.astype(COMPUTE_DTYPE))


# ------------------------------ model (glue) ---------------------------------

def init_linear(key, fan_in, fan_out):
    """PyTorch nn.Linear default init (uniform +-1/sqrt(fan_in)); W stored [in,out]."""
    kw, kb = jax.random.split(key)
    bound = 1.0 / (fan_in ** 0.5)
    w = jax.random.uniform(kw, (fan_in, fan_out), jnp.float32, -bound, bound)
    b = jax.random.uniform(kb, (fan_out,), jnp.float32, -bound, bound)
    return w, b


def init_gnn_params(key, in_node_nf, in_edge_nf, hidden_nf, n_layers, out_node_nf):
    keys = jax.random.split(key, 2 + 4 * n_layers)
    params = {}
    params["emb_w"], params["emb_b"] = init_linear(keys[0], in_node_nf, hidden_nf)
    params["out_w"], params["out_b"] = init_linear(keys[1], hidden_nf, out_node_nf)
    layers = []
    ki = 2
    for _ in range(n_layers):
        lp = {}
        ew1, lp["e_b1"] = init_linear(keys[ki], 2 * hidden_nf + in_edge_nf, hidden_nf); ki += 1
        lp["e_w1s"] = ew1[:hidden_nf]                       # split-K chunks of W1
        lp["e_w1t"] = ew1[hidden_nf:2 * hidden_nf]
        lp["e_w1e"] = ew1[2 * hidden_nf:] if in_edge_nf > 0 else None
        lp["e_w2"], lp["e_b2"] = init_linear(keys[ki], hidden_nf, hidden_nf); ki += 1
        nw1, lp["n_b1"] = init_linear(keys[ki], 2 * hidden_nf, hidden_nf); ki += 1
        lp["n_w1h"] = nw1[:hidden_nf]
        lp["n_w1a"] = nw1[hidden_nf:]
        lp["n_w2"], lp["n_b2"] = init_linear(keys[ki], hidden_nf, hidden_nf); ki += 1
        layers.append(lp)
    params["layers"] = layers
    return params


def gcl_forward(lp, h_p, row_gather, col_gather, row_seg, n_pad,
                edge_attr_p, node_mask_p, edge_mask_p,
                normalization_factor, aggregation_method):
    # TODO(synk): h[row]/h[col] gathers remain XLA gathers in the wrapper; an
    # in-kernel scalar-prefetch/DMA gather would remove two [E, H] HBM copies.
    src = jnp.take(h_p, row_gather, axis=0)
    tgt = jnp.take(h_p, col_gather, axis=0)

    edge_feat = pallas_edge_mlp(src, tgt, edge_attr_p, edge_mask_p,
                                lp["e_w1s"], lp["e_w1t"], lp["e_w1e"],
                                lp["e_b1"], lp["e_w2"], lp["e_b2"])
    agg = pallas_segment_sum(edge_feat, row_seg, n_pad,
                             normalization_factor, aggregation_method)
    h_p = pallas_node_mlp(h_p, agg, node_mask_p,
                          lp["n_w1h"], lp["n_w1a"], lp["n_b1"],
                          lp["n_w2"], lp["n_b2"])
    return h_p


def gnn_forward(params, h, edges, edge_attr=None, node_mask=None, edge_mask=None,
                normalization_factor=1.0, aggregation_method="sum"):
    row, col = edges
    n_nodes = int(h.shape[0])
    n_edges = int(row.shape[0])
    _, n_pad = _tile_and_pad(n_nodes)
    _, e_pad = _tile_and_pad(n_edges)

    # Pad everything once up-front. Padded edges gather node 0 (real values) but
    # scatter to the dead segment id `n_nodes` and (if present) a zero edge_mask,
    # so real rows are unaffected; padded node rows are sliced off at the end.
    h_p = _pad_rows(h.astype(jnp.float32), n_pad)
    row_gather = _pad_rows(row.astype(jnp.int32), e_pad, 0)
    col_gather = _pad_rows(col.astype(jnp.int32), e_pad, 0)
    row_seg = _pad_rows(row.astype(jnp.int32), e_pad, n_nodes)
    ea_p = None if edge_attr is None else _pad_rows(edge_attr.astype(COMPUTE_DTYPE), e_pad)
    em_p = None if edge_mask is None else _pad_rows(edge_mask.astype(jnp.float32), e_pad)
    nm_p = None if node_mask is None else _pad_rows(node_mask.astype(jnp.float32), n_pad)

    h_p = pallas_linear(h_p, params["emb_w"], params["emb_b"], out_dtype=COMPUTE_DTYPE)
    for lp in params["layers"]:
        h_p = gcl_forward(lp, h_p, row_gather, col_gather, row_seg, n_pad,
                          ea_p, nm_p, em_p, normalization_factor, aggregation_method)
    out = pallas_linear(h_p, params["out_w"], params["out_b"], out_dtype=jnp.float32)
    out = out[:n_nodes]
    if node_mask is not None:
        out = out * node_mask.astype(jnp.float32)
    return out


# --------------------------------- driver ------------------------------------

if __name__ == "__main__":
    key = jax.random.PRNGKey(0)
    n_nodes, in_node_nf, in_edge_nf = 8, 8, 4
    hidden_nf, n_layers = 128, 4            # lane-dense hidden dim
    out_node_nf = in_node_nf

    # fully connected directed edges without self loops: E = 8*7 = 56
    rows, cols = [], []
    for i in range(n_nodes):
        for j in range(n_nodes):
            if i != j:
                rows.append(i)
                cols.append(j)
    row = jnp.array(rows, dtype=jnp.int32)
    col = jnp.array(cols, dtype=jnp.int32)
    E = int(row.shape[0])

    keys = jax.random.split(key, 5)
    h = jax.random.normal(keys[0], (n_nodes, in_node_nf), jnp.float32)
    edge_attr = jax.random.normal(keys[1], (E, in_edge_nf), jnp.float32)
    node_mask = (jax.random.uniform(keys[2], (n_nodes, 1)) > 0.2).astype(jnp.float32)
    edge_mask = node_mask[row] * node_mask[col]              # (E, 1)

    params = init_gnn_params(keys[3], in_node_nf, in_edge_nf, hidden_nf,
                             n_layers, out_node_nf)

    out = gnn_forward(params, h, (row, col), edge_attr=edge_attr,
                      node_mask=node_mask, edge_mask=edge_mask,
                      normalization_factor=1.0, aggregation_method="sum")
    out = jax.block_until_ready(out)
    assert out.shape == (n_nodes, out_node_nf)
    assert bool(jnp.all(jnp.isfinite(out)))
    print("KERNEL_OK")
</pallas_src>

<mosaic_0001>
module attributes {stable_mosaic.version = 11 : i64} {
  func.func @_linear_kernel(%arg0: i32, %arg1: memref<16x8xbf16, #tpu.memory_space<vmem>>, %arg2: memref<8x128xbf16, #tpu.memory_space<vmem>>, %arg3: memref<1x128xf32, #tpu.memory_space<vmem>>, %arg4: memref<16x128xbf16, #tpu.memory_space<vmem>>) attributes {dimension_semantics = [#tpu.dimension_semantics<parallel>], iteration_bounds = array<i64: 1>, scalar_prefetch = 0 : i64, scratch_operands = 0 : i64, tpu.core_type = #tpu.core_type<tc>, window_params = [{transform_indices = @transform_0, window_bounds = array<i64: 16, 8>}, {pipeline_mode = #tpu.pipeline_mode<synchronous>, transform_indices = @transform_1, window_bounds = array<i64: 8, 128>}, {pipeline_mode = #tpu.pipeline_mode<synchronous>, transform_indices = @transform_2, window_bounds = array<i64: 1, 128>}, {transform_indices = @transform_3, window_bounds = array<i64: 16, 128>}]} {
    %c0 = arith.constant 0 : index
    %c0_0 = arith.constant 0 : index
    %0 = vector.load %arg1[%c0, %c0_0] : memref<16x8xbf16, #tpu.memory_space<vmem>>, vector<16x8xbf16>
    %c0_1 = arith.constant 0 : index
    %c0_2 = arith.constant 0 : index
    %1 = vector.load %arg2[%c0_1, %c0_2] : memref<8x128xbf16, #tpu.memory_space<vmem>>, vector<8x128xbf16>
    %cst = arith.constant dense<0.000000e+00> : vector<16x128xf32>
    %2 = tpu.matmul %0, %1, %cst {dimension_numbers = #tpu.dot_dimension_numbers<[1], [0], [0], [1], [0, 0, 1, 1], [], []>} : vector<16x8xbf16>, vector<8x128xbf16>, vector<16x128xf32> -> vector<16x128xf32>
    %c0_3 = arith.constant 0 : index
    %c0_4 = arith.constant 0 : index
    %3 = vector.load %arg3[%c0_3, %c0_4] : memref<1x128xf32, #tpu.memory_space<vmem>>, vector<1x128xf32>
    %4 = vector.broadcast %3 : vector<1x128xf32> to vector<16x128xf32>
    %5 = arith.addf %2, %4 : vector<16x128xf32>
    %6 = arith.truncf %5 : vector<16x128xf32> to vector<16x128xbf16>
    %c0_5 = arith.constant 0 : index
    %c0_6 = arith.constant 0 : index
    %7 = vector.load %arg4[%c0_5, %c0_6] : memref<16x128xbf16, #tpu.memory_space<vmem>>, vector<16x128xbf16>
    tpu.vector_store %arg4[%c0_5, %c0_6], %6 {strides = array<i32>} : memref<16x128xbf16, #tpu.memory_space<vmem>>, vector<16x128xbf16>,
    return
  }
  func.func @transform_0(%arg0: i32) -> (i32, i32) {
    %c0_i32 = arith.constant 0 : i32
    %c0_i32_0 = arith.constant 0 : i32
    return %arg0, %c0_i32 : i32, i32
  }
  func.func @transform_1(%arg0: i32) -> (i32, i32) {
    %c0_i32 = arith.constant 0 : i32
    %c0_i32_0 = arith.constant 0 : i32
    %c0_i32_1 = arith.constant 0 : i32
    return %c0_i32, %c0_i32_0 : i32, i32
  }
  func.func @transform_2(%arg0: i32) -> (i32, i32) {
    %c0_i32 = arith.constant 0 : i32
    %c0_i32_0 = arith.constant 0 : i32
    %c0_i32_1 = arith.constant 0 : i32
    return %c0_i32, %c0_i32_0 : i32, i32
  }
  func.func @transform_3(%arg0: i32) -> (i32, i32) {
    %c0_i32 = arith.constant 0 : i32
    %c0_i32_0 = arith.constant 0 : i32
    return %arg0, %c0_i32 : i32, i32
  }
}

</mosaic_0001>

<bundles_post_ra>
// kernel: tpu_custom_call.1
= control target key start
LH: loop header
LB: loop body
LE: loop exit
PB: predicated region body
PF: predicated region fallthrough
CT: control target
= control target key end

     0   :  { %vm35_vm0 = vcmask 1043456   ;;  %v154_v1 = vmov 0.0   ;;  %vm155_vm1 = vmmov 0   ;;  %vm31_vm2 = vcmask 64512   ;;  %s191_s0 = inlined_call_operand.vmem [shape: bf16[16,8], index: 0, kind: input, shape index: {}]   ;;  %s192_s1 = inlined_call_operand.vmem [shape: bf16[8,128], index: 1, kind: input, shape index: {}]   ;;  %s193_s2 = inlined_call_operand.vmem [shape: f32[1,128], index: 2, kind: input, shape index: {}]   ;;  %s194_s3 = inlined_call_operand.hbm [shape: bf16[16,128], index: 3, kind: output, shape index: {}]  }
   0x1   :  { %v18_v0 = vld [vmem:[%s192_s1] sm:$0xf]  ;;  %120 = vmatprep.subr.bf16.mxu0 %v154_v1  ;;  %122 = vmatprep.mubr.msk.bf16.mxu0 %vm155_vm1, %v154_v1 }
   0x2   :  { %v37_v2 = vsel %vm35_vm0, %v18_v0, 0  ;;  %v131_v3 = vld [vmem:[%s191_s0] sm:$0xff]  }
   0x3   :  { %121 = vmatpush3.bf16.msra.mxu0 %v37_v2 }
   0x4   :  { %8 = vsyncpa [#allocation3], 0  ;;  %v106_v5 = vld [vmem:[%s193_s2] ss:$0 sm:$0xff]  ;;  %s156_s1 = smov [#allocation2]  }
   0x5   :  { %s95_s18 = sshll.u32 %s156_s1, 4  ;;  %s96_s18 = int_to_ptr.vmem [resolvable:$true] %s95_s18 }
   0x6   :  { %123 = vmatmul.mubr.msk.bf16.vlgmr.msra.gmra.mxu0 %vm31_vm2, %v131_v3  ;;  %s132_s0 = scalar_lea.vmem %s96_s18, 128  ;;  %p137_p1 = scmp.lt.s32.totalorder %s96_s18, %s96_s18 }
   0x7   :  { %p133_p0 = scmp.ne.s32.totalorder %s96_s18, %s132_s0  ;;  %p138_p2 = scmp.lt.s32.totalorder %s132_s0, %s132_s0 }
   0x9   :  { %p139_p3 = por %p138_p2, %p137_p1 }
   0xb   :  { %p140_p4 = pnand %p139_p3, %p133_p0 }
  0xc6   :  { %v73_v4 = vpop.f32.mrf.mxu0 }
  0xc7   :  { %v74_v8 = vadd.f32 %v106_v5, %v73_v4 }
  0xc8   :  { %v124_v6 = vpop.f32.mrf.mxu0 }
  0xca   :  { %v76_v7 = vpop.f32.mrf.mxu0 }
  0xcb   :  { %v77_v9 = vadd.f32 %v106_v5, %v76_v7 }
  0xcc   :  { %v125_v10 = vpop.f32.mrf.mxu0 }
  0xcd   :  { %v116_v11 = vpack.c.bf16 %v77_v9, %v74_v8 }
  0xcf   :  { %117 = vst [vmem:[#allocation2] sm:$0xff] %v116_v11  }
  0xd0   :  { %143 = shalt.err (!%p140_p4)
}
  0xd1   :  { %s157_s19 = smov 64   ;;  %s158_s20 = smov 4  }
  0xd2   :  { %101 = dma.vmem_to_hbm [thread:$0]  %s96_s18, 128, %s194_s3, [#allocation3], %s157_s19, %s157_s19, %s158_s20  }
  0xd3   :  { %152 = dma.done.wait [#allocation3], 128  }
  0xd4   :  { %153 = vsyncadd [#allocation3], 4294967168 }
  0xd5   :  { %105 = vsyncpa [#allocation3], 1 }

</bundles_post_ra>
